<compile_context>
chip_gen: v5e
topology: v5e:2x2
jax: 0.10.0
libtpu: 0.0.40
codegen_flags: <defaults>
</compile_context>

<pallas_src>
import jax
import jax.numpy as jnp
from jax.experimental import pallas as pl
from jax.experimental.pallas import tpu as pltpu


# ---------------------------------------------------------------------------
# In-kernel helpers (all shapes static; Python loops unroll at trace time)
# ---------------------------------------------------------------------------
def _rowstack(xs):
    """Stack per-batch 2D slabs along the row (sublane) axis."""
    return xs[0] if len(xs) == 1 else jnp.concatenate(xs, axis=0)


def _split_rows(y, n, h):
    """Inverse of _rowstack: split (n*h, C) back into n slabs of (h, C)."""
    return [y[b * h:(b + 1) * h] for b in range(n)]


def _im2col3_same(x):
    """(h, C) -> (h, 3C): ZeroPad2d((0,0,1,1)) + 3 seq-taps fused on the lane axis."""
    h, c = x.shape
    zero = jnp.zeros((1, c), dtype=x.dtype)
    xp = jnp.concatenate([zero, x, zero], axis=0)                  # (h+2, C)
    return jnp.concatenate([xp[0:h], xp[1:h + 1], xp[2:h + 2]], axis=-1)


def _conv3_same(xs, wc_flat, bc):
    """padding1 + Conv2d(nf, nf, (3,1)) on a list of per-batch (h, NF) slabs.

    All batches are row-stacked into a single (B*h, 3NF) x (3NF, NF) matmul.
    """
    h = xs[0].shape[0]
    xw = _rowstack([_im2col3_same(x) for x in xs])                 # (B*h, 3NF)
    y = jnp.dot(xw, wc_flat, preferred_element_type=jnp.float32) + bc
    return _split_rows(y, len(xs), h)


def _relu_list(xs):
    return [jnp.maximum(x, 0.0) for x in xs]


def _maxpool3_s2(x):
    """padding2 (bottom zero row) + MaxPool2d((3,1), stride=2) on (h, NF)."""
    h, c = x.shape
    zero = jnp.zeros((1, c), dtype=x.dtype)
    xp = jnp.concatenate([x, zero], axis=0)                        # (h+1, C)
    # fused window max: m[i] = max(xp[i], xp[i+1], xp[i+2])
    m = jnp.maximum(jnp.maximum(xp[0:h - 1], xp[1:h]), xp[2:h + 1])
    out_h = (h - 2) // 2 + 1
    if out_h == 1:
        return m[0:1]
    # downsample by 2: out_h is tiny (<=3 for S=8), so a few static row picks
    return jnp.concatenate([m[2 * j:2 * j + 1] for j in range(out_h)], axis=0)


# ---------------------------------------------------------------------------
# Pallas kernel (no grid: whole batch per invocation)
# ---------------------------------------------------------------------------
def dpcnn_kernel(xemb_ref, wrf_ref, br_ref, wcf_ref, bc_ref, wfc_ref, bfc_ref,
                 logits_ref, emb_out_ref):
    x = xemb_ref[...]            # (B, S, E)
    wrf = wrf_ref[...]           # (3E, NF)
    br = br_ref[...]             # (1, NF)
    wcf = wcf_ref[...]           # (3NF, NF)
    bc = bc_ref[...]             # (1, NF)

    b_sz, s, _ = x.shape
    h0 = s - 2

    # conv_region: valid conv with kernel (3, E) as ONE row-stacked im2col matmul
    slabs = []
    for b in range(b_sz):
        xb = x[b]                                                   # (S, E)
        slabs.append(jnp.concatenate([xb[0:h0], xb[1:h0 + 1], xb[2:h0 + 2]],
                                     axis=-1))                      # (h0, 3E)
    xw = _rowstack(slabs)                                           # (B*h0, 3E)
    y = jnp.dot(xw, wrf, preferred_element_type=jnp.float32) + br   # (B*h0, NF)
    ys = _split_rows(y, b_sz, h0)                                   # B x (h0, NF)

    # padding1 -> relu -> conv, applied twice (matches the reference forward)
    ys = _conv3_same(_relu_list(ys), wcf, bc)
    ys = _conv3_same(_relu_list(ys), wcf, bc)

    # pyramid blocks until height == 1 (shapes static -> unrolled in Python)
    while ys[0].shape[0] >= 2:
        pxs = [_maxpool3_s2(yb) for yb in ys]
        zs = _conv3_same(_relu_list(pxs), wcf, bc)
        zs = _conv3_same(_relu_list(zs), wcf, bc)
        ys = [z + p for z, p in zip(zs, pxs)]                       # residual add

    # ys: B x (1, NF) -> (B, NF); fc is one row-stacked matmul for the batch
    emb = _rowstack(ys)                                             # (B, NF)
    emb_out_ref[...] = emb
    logits_ref[...] = (jnp.dot(emb, wfc_ref[...],
                               preferred_element_type=jnp.float32) + bfc_ref[...])


# ---------------------------------------------------------------------------
# Wrapper
# ---------------------------------------------------------------------------
def dpcnn_forward(x_emb, wr, br, wc, bc, wfc_t, bfc):
    B, S, E = x_emb.shape
    NF = wr.shape[2]
    C = wfc_t.shape[1]

    # Fuse the 3 conv taps into the contraction dim (im2col weights), on host.
    wr_flat = wr.reshape(3 * E, NF)      # rows: [tap0 | tap1 | tap2]
    wc_flat = wc.reshape(3 * NF, NF)

    vmem = lambda: pl.BlockSpec(memory_space=pltpu.MemorySpace.VMEM)
    return pl.pallas_call(
        dpcnn_kernel,
        out_shape=(jax.ShapeDtypeStruct((B, C), jnp.float32),
                   jax.ShapeDtypeStruct((B, NF), jnp.float32)),
        in_specs=[vmem() for _ in range(7)],
        out_specs=(vmem(), vmem()),
    )(x_emb, wr_flat, br, wc_flat, bc, wfc_t, bfc)


# ---------------------------------------------------------------------------
# Pure-JAX reference (same math) for a correctness check
# ---------------------------------------------------------------------------
def dpcnn_reference(x_emb, wr, br, wc, bc, wfc_t, bfc):
    def conv3_same(x):
        h = x.shape[0]
        xp = jnp.pad(x, ((1, 1), (0, 0)))
        return xp[0:h] @ wc[0] + xp[1:h + 1] @ wc[1] + xp[2:h + 2] @ wc[2] + bc

    logits, embs = [], []
    for b in range(x_emb.shape[0]):
        x = x_emb[b]
        h0 = x.shape[0] - 2
        y = x[0:h0] @ wr[0] + x[1:h0 + 1] @ wr[1] + x[2:h0 + 2] @ wr[2] + br
        y = conv3_same(jnp.maximum(y, 0.0))
        y = conv3_same(jnp.maximum(y, 0.0))
        while y.shape[0] >= 2:
            h = y.shape[0]
            xp = jnp.concatenate([y, jnp.zeros((1, y.shape[1]), y.dtype)], axis=0)
            out_h = (h - 2) // 2 + 1
            px = jnp.stack([jnp.max(xp[2 * j:2 * j + 3], axis=0) for j in range(out_h)])
            z = conv3_same(jnp.maximum(px, 0.0))
            z = conv3_same(jnp.maximum(z, 0.0))
            y = z + px
        embs.append(y[0])
        logits.append(y[0] @ wfc_t + bfc[0])
    return jnp.stack(logits), jnp.stack(embs)


# ---------------------------------------------------------------------------
# Main
# ---------------------------------------------------------------------------
if __name__ == "__main__":
    B, S, E, NF, CLASSES, VOCAB = 2, 8, 16, 32, 8, 50

    key = jax.random.PRNGKey(0)
    k_txt, k_emb, k_wr, k_br, k_wc, k_bc, k_fc, k_bfc = jax.random.split(key, 8)

    text = jax.random.randint(k_txt, (B, S), 0, VOCAB)
    text_lengths = jnp.full((B,), S, dtype=jnp.int32)  # unused, kept for parity
    emb_table = jax.random.normal(k_emb, (VOCAB, E), dtype=jnp.float32) * 0.5

    wr = jax.random.normal(k_wr, (3, E, NF), dtype=jnp.float32) * 0.1
    br = jax.random.normal(k_br, (1, NF), dtype=jnp.float32) * 0.1
    wc = jax.random.normal(k_wc, (3, NF, NF), dtype=jnp.float32) * 0.1
    bc = jax.random.normal(k_bc, (1, NF), dtype=jnp.float32) * 0.1
    wfc_t = jax.random.normal(k_fc, (NF, CLASSES), dtype=jnp.float32) * 0.1
    bfc = jax.random.normal(k_bfc, (1, CLASSES), dtype=jnp.float32) * 0.1

    # Embedding lookup (glue, plain JAX), matches nn.Embedding + unsqueeze
    x_emb = jnp.take(emb_table, text, axis=0).astype(jnp.float32)  # (B, S, E)

    logits, x_embedding = dpcnn_forward(x_emb, wr, br, wc, bc, wfc_t, bfc)
    jax.block_until_ready((logits, x_embedding))

    ref_logits, ref_emb = dpcnn_reference(x_emb, wr, br, wc, bc, wfc_t, bfc)
    assert jnp.allclose(logits, ref_logits, atol=1e-4, rtol=1e-4)
    assert jnp.allclose(x_embedding, ref_emb, atol=1e-4, rtol=1e-4)

    print("KERNEL_OK")
</pallas_src>

<mosaic_0001>
module attributes {stable_mosaic.version = 11 : i64} {
  func.func @dpcnn_kernel(%arg0: memref<2x8x16xf32, #tpu.memory_space<vmem>>, %arg1: memref<48x32xf32, #tpu.memory_space<vmem>>, %arg2: memref<1x32xf32, #tpu.memory_space<vmem>>, %arg3: memref<96x32xf32, #tpu.memory_space<vmem>>, %arg4: memref<1x32xf32, #tpu.memory_space<vmem>>, %arg5: memref<32x8xf32, #tpu.memory_space<vmem>>, %arg6: memref<1x8xf32, #tpu.memory_space<vmem>>, %arg7: memref<2x8xf32, #tpu.memory_space<vmem>>, %arg8: memref<2x32xf32, #tpu.memory_space<vmem>>) attributes {dimension_semantics = [], scalar_prefetch = 0 : i64, scratch_operands = 0 : i64, tpu.core_type = #tpu.core_type<tc>} {
    %c0 = arith.constant 0 : index
    %c0_0 = arith.constant 0 : index
    %c0_1 = arith.constant 0 : index
    %0 = vector.load %arg0[%c0, %c0_0, %c0_1] : memref<2x8x16xf32, #tpu.memory_space<vmem>>, vector<2x8x16xf32>
    %c0_2 = arith.constant 0 : index
    %c0_3 = arith.constant 0 : index
    %1 = vector.load %arg1[%c0_2, %c0_3] : memref<48x32xf32, #tpu.memory_space<vmem>>, vector<48x32xf32>
    %c0_4 = arith.constant 0 : index
    %c0_5 = arith.constant 0 : index
    %2 = vector.load %arg2[%c0_4, %c0_5] : memref<1x32xf32, #tpu.memory_space<vmem>>, vector<1x32xf32>
    %c0_6 = arith.constant 0 : index
    %c0_7 = arith.constant 0 : index
    %3 = vector.load %arg3[%c0_6, %c0_7] : memref<96x32xf32, #tpu.memory_space<vmem>>, vector<96x32xf32>
    %c0_8 = arith.constant 0 : index
    %c0_9 = arith.constant 0 : index
    %4 = vector.load %arg4[%c0_8, %c0_9] : memref<1x32xf32, #tpu.memory_space<vmem>>, vector<1x32xf32>
    %5 = vector.extract_strided_slice %0 {offsets = [0, 0, 0], sizes = [1, 8, 16], strides = [1, 1, 1]} : vector<2x8x16xf32> to vector<1x8x16xf32>
    %6 = vector.shape_cast %5 : vector<1x8x16xf32> to vector<8x16xf32>
    %7 = vector.extract_strided_slice %6 {offsets = [0, 0], sizes = [6, 16], strides = [1, 1]} : vector<8x16xf32> to vector<6x16xf32>
    %8 = vector.extract_strided_slice %6 {offsets = [1, 0], sizes = [6, 16], strides = [1, 1]} : vector<8x16xf32> to vector<6x16xf32>
    %9 = vector.extract_strided_slice %6 {offsets = [2, 0], sizes = [6, 16], strides = [1, 1]} : vector<8x16xf32> to vector<6x16xf32>
    %10 = tpu.concatenate %7, %8, %9 in 1 : vector<6x16xf32>, vector<6x16xf32>, vector<6x16xf32> -> vector<6x48xf32>
    %11 = vector.extract_strided_slice %0 {offsets = [1, 0, 0], sizes = [1, 8, 16], strides = [1, 1, 1]} : vector<2x8x16xf32> to vector<1x8x16xf32>
    %12 = vector.shape_cast %11 : vector<1x8x16xf32> to vector<8x16xf32>
    %13 = vector.extract_strided_slice %12 {offsets = [0, 0], sizes = [6, 16], strides = [1, 1]} : vector<8x16xf32> to vector<6x16xf32>
    %14 = vector.extract_strided_slice %12 {offsets = [1, 0], sizes = [6, 16], strides = [1, 1]} : vector<8x16xf32> to vector<6x16xf32>
    %15 = vector.extract_strided_slice %12 {offsets = [2, 0], sizes = [6, 16], strides = [1, 1]} : vector<8x16xf32> to vector<6x16xf32>
    %16 = tpu.concatenate %13, %14, %15 in 1 : vector<6x16xf32>, vector<6x16xf32>, vector<6x16xf32> -> vector<6x48xf32>
    %17 = tpu.concatenate %10, %16 in 0 : vector<6x48xf32>, vector<6x48xf32> -> vector<12x48xf32>
    %cst = arith.constant dense<0.000000e+00> : vector<12x32xf32>
    %18 = tpu.matmul %17, %1, %cst {dimension_numbers = #tpu.dot_dimension_numbers<[1], [0], [0], [1], [0, 0, 1, 1], [], []>} : vector<12x48xf32>, vector<48x32xf32>, vector<12x32xf32> -> vector<12x32xf32>
    %19 = vector.broadcast %2 : vector<1x32xf32> to vector<12x32xf32>
    %20 = arith.addf %18, %19 : vector<12x32xf32>
    %21 = vector.extract_strided_slice %20 {offsets = [0, 0], sizes = [6, 32], strides = [1, 1]} : vector<12x32xf32> to vector<6x32xf32>
    %22 = vector.extract_strided_slice %20 {offsets = [6, 0], sizes = [6, 32], strides = [1, 1]} : vector<12x32xf32> to vector<6x32xf32>
    %cst_10 = arith.constant 0.000000e+00 : f32
    %23 = vector.broadcast %cst_10 : f32 to vector<6x32xf32>
    %24 = arith.maximumf %21, %23 : vector<6x32xf32>
    %cst_11 = arith.constant 0.000000e+00 : f32
    %25 = vector.broadcast %cst_11 : f32 to vector<6x32xf32>
    %26 = arith.maximumf %22, %25 : vector<6x32xf32>
    %cst_12 = arith.constant 0.000000e+00 : f32
    %27 = vector.broadcast %cst_12 : f32 to vector<1x32xf32>
    %28 = tpu.concatenate %27, %24, %27 in 0 : vector<1x32xf32>, vector<6x32xf32>, vector<1x32xf32> -> vector<8x32xf32>
    %29 = vector.extract_strided_slice %28 {offsets = [0, 0], sizes = [6, 32], strides = [1, 1]} : vector<8x32xf32> to vector<6x32xf32>
    %30 = vector.extract_strided_slice %28 {offsets = [1, 0], sizes = [6, 32], strides = [1, 1]} : vector<8x32xf32> to vector<6x32xf32>
    %31 = vector.extract_strided_slice %28 {offsets = [2, 0], sizes = [6, 32], strides = [1, 1]} : vector<8x32xf32> to vector<6x32xf32>
    %32 = tpu.concatenate %29, %30, %31 in 1 : vector<6x32xf32>, vector<6x32xf32>, vector<6x32xf32> -> vector<6x96xf32>
    %cst_13 = arith.constant 0.000000e+00 : f32
    %33 = vector.broadcast %cst_13 : f32 to vector<1x32xf32>
    %34 = tpu.concatenate %33, %26, %33 in 0 : vector<1x32xf32>, vector<6x32xf32>, vector<1x32xf32> -> vector<8x32xf32>
    %35 = vector.extract_strided_slice %34 {offsets = [0, 0], sizes = [6, 32], strides = [1, 1]} : vector<8x32xf32> to vector<6x32xf32>
    %36 = vector.extract_strided_slice %34 {offsets = [1, 0], sizes = [6, 32], strides = [1, 1]} : vector<8x32xf32> to vector<6x32xf32>
    %37 = vector.extract_strided_slice %34 {offsets = [2, 0], sizes = [6, 32], strides = [1, 1]} : vector<8x32xf32> to vector<6x32xf32>
    %38 = tpu.concatenate %35, %36, %37 in 1 : vector<6x32xf32>, vector<6x32xf32>, vector<6x32xf32> -> vector<6x96xf32>
    %39 = tpu.concatenate %32, %38 in 0 : vector<6x96xf32>, vector<6x96xf32> -> vector<12x96xf32>
    %cst_14 = arith.constant dense<0.000000e+00> : vector<12x32xf32>
    %40 = tpu.matmul %39, %3, %cst_14 {dimension_numbers = #tpu.dot_dimension_numbers<[1], [0], [0], [1], [0, 0, 1, 1], [], []>} : vector<12x96xf32>, vector<96x32xf32>, vector<12x32xf32> -> vector<12x32xf32>
    %41 = vector.broadcast %4 : vector<1x32xf32> to vector<12x32xf32>
    %42 = arith.addf %40, %41 : vector<12x32xf32>
    %43 = vector.extract_strided_slice %42 {offsets = [0, 0], sizes = [6, 32], strides = [1, 1]} : vector<12x32xf32> to vector<6x32xf32>
    %44 = vector.extract_strided_slice %42 {offsets = [6, 0], sizes = [6, 32], strides = [1, 1]} : vector<12x32xf32> to vector<6x32xf32>
    %cst_15 = arith.constant 0.000000e+00 : f32
    %45 = vector.broadcast %cst_15 : f32 to vector<6x32xf32>
    %46 = arith.maximumf %43, %45 : vector<6x32xf32>
    %cst_16 = arith.constant 0.000000e+00 : f32
    %47 = vector.broadcast %cst_16 : f32 to vector<6x32xf32>
    %48 = arith.maximumf %44, %47 : vector<6x32xf32>
    %cst_17 = arith.constant 0.000000e+00 : f32
    %49 = vector.broadcast %cst_17 : f32 to vector<1x32xf32>
    %50 = tpu.concatenate %49, %46, %49 in 0 : vector<1x32xf32>, vector<6x32xf32>, vector<1x32xf32> -> vector<8x32xf32>
    %51 = vector.extract_strided_slice %50 {offsets = [0, 0], sizes = [6, 32], strides = [1, 1]} : vector<8x32xf32> to vector<6x32xf32>
    %52 = vector.extract_strided_slice %50 {offsets = [1, 0], sizes = [6, 32], strides = [1, 1]} : vector<8x32xf32> to vector<6x32xf32>
    %53 = vector.extract_strided_slice %50 {offsets = [2, 0], sizes = [6, 32], strides = [1, 1]} : vector<8x32xf32> to vector<6x32xf32>
    %54 = tpu.concatenate %51, %52, %53 in 1 : vector<6x32xf32>, vector<6x32xf32>, vector<6x32xf32> -> vector<6x96xf32>
    %cst_18 = arith.constant 0.000000e+00 : f32
    %55 = vector.broadcast %cst_18 : f32 to vector<1x32xf32>
    %56 = tpu.concatenate %55, %48, %55 in 0 : vector<1x32xf32>, vector<6x32xf32>, vector<1x32xf32> -> vector<8x32xf32>
    %57 = vector.extract_strided_slice %56 {offsets = [0, 0], sizes = [6, 32], strides = [1, 1]} : vector<8x32xf32> to vector<6x32xf32>
    %58 = vector.extract_strided_slice %56 {offsets = [1, 0], sizes = [6, 32], strides = [1, 1]} : vector<8x32xf32> to vector<6x32xf32>
    %59 = vector.extract_strided_slice %56 {offsets = [2, 0], sizes = [6, 32], strides = [1, 1]} : vector<8x32xf32> to vector<6x32xf32>
    %60 = tpu.concatenate %57, %58, %59 in 1 : vector<6x32xf32>, vector<6x32xf32>, vector<6x32xf32> -> vector<6x96xf32>
    %61 = tpu.concatenate %54, %60 in 0 : vector<6x96xf32>, vector<6x96xf32> -> vector<12x96xf32>
    %cst_19 = arith.constant dense<0.000000e+00> : vector<12x32xf32>
    %62 = tpu.matmul %61, %3, %cst_19 {dimension_numbers = #tpu.dot_dimension_numbers<[1], [0], [0], [1], [0, 0, 1, 1], [], []>} : vector<12x96xf32>, vector<96x32xf32>, vector<12x32xf32> -> vector<12x32xf32>
    %63 = vector.broadcast %4 : vector<1x32xf32> to vector<12x32xf32>
    %64 = arith.addf %62, %63 : vector<12x32xf32>
    %65 = vector.extract_strided_slice %64 {offsets = [0, 0], sizes = [6, 32], strides = [1, 1]} : vector<12x32xf32> to vector<6x32xf32>
    %66 = vector.extract_strided_slice %64 {offsets = [6, 0], sizes = [6, 32], strides = [1, 1]} : vector<12x32xf32> to vector<6x32xf32>
    %cst_20 = arith.constant 0.000000e+00 : f32
    %67 = vector.broadcast %cst_20 : f32 to vector<1x32xf32>
    %68 = tpu.concatenate %65, %67 in 0 : vector<6x32xf32>, vector<1x32xf32> -> vector<7x32xf32>
    %69 = vector.extract_strided_slice %68 {offsets = [0, 0], sizes = [5, 32], strides = [1, 1]} : vector<7x32xf32> to vector<5x32xf32>
    %70 = vector.extract_strided_slice %68 {offsets = [1, 0], sizes = [5, 32], strides = [1, 1]} : vector<7x32xf32> to vector<5x32xf32>
    %71 = arith.maximumf %69, %70 : vector<5x32xf32>
    %72 = vector.extract_strided_slice %68 {offsets = [2, 0], sizes = [5, 32], strides = [1, 1]} : vector<7x32xf32> to vector<5x32xf32>
    %73 = arith.maximumf %71, %72 : vector<5x32xf32>
    %74 = vector.extract_strided_slice %73 {offsets = [0, 0], sizes = [1, 32], strides = [1, 1]} : vector<5x32xf32> to vector<1x32xf32>
    %75 = vector.extract_strided_slice %73 {offsets = [2, 0], sizes = [1, 32], strides = [1, 1]} : vector<5x32xf32> to vector<1x32xf32>
    %76 = vector.extract_strided_slice %73 {offsets = [4, 0], sizes = [1, 32], strides = [1, 1]} : vector<5x32xf32> to vector<1x32xf32>
    %77 = tpu.concatenate %74, %75, %76 in 0 : vector<1x32xf32>, vector<1x32xf32>, vector<1x32xf32> -> vector<3x32xf32>
    %cst_21 = arith.constant 0.000000e+00 : f32
    %78 = vector.broadcast %cst_21 : f32 to vector<1x32xf32>
    %79 = tpu.concatenate %66, %78 in 0 : vector<6x32xf32>, vector<1x32xf32> -> vector<7x32xf32>
    %80 = vector.extract_strided_slice %79 {offsets = [0, 0], sizes = [5, 32], strides = [1, 1]} : vector<7x32xf32> to vector<5x32xf32>
    %81 = vector.extract_strided_slice %79 {offsets = [1, 0], sizes = [5, 32], strides = [1, 1]} : vector<7x32xf32> to vector<5x32xf32>
    %82 = arith.maximumf %80, %81 : vector<5x32xf32>
    %83 = vector.extract_strided_slice %79 {offsets = [2, 0], sizes = [5, 32], strides = [1, 1]} : vector<7x32xf32> to vector<5x32xf32>
    %84 = arith.maximumf %82, %83 : vector<5x32xf32>
    %85 = vector.extract_strided_slice %84 {offsets = [0, 0], sizes = [1, 32], strides = [1, 1]} : vector<5x32xf32> to vector<1x32xf32>
    %86 = vector.extract_strided_slice %84 {offsets = [2, 0], sizes = [1, 32], strides = [1, 1]} : vector<5x32xf32> to vector<1x32xf32>
    %87 = vector.extract_strided_slice %84 {offsets = [4, 0], sizes = [1, 32], strides = [1, 1]} : vector<5x32xf32> to vector<1x32xf32>
    %88 = tpu.concatenate %85, %86, %87 in 0 : vector<1x32xf32>, vector<1x32xf32>, vector<1x32xf32> -> vector<3x32xf32>
    %cst_22 = arith.constant 0.000000e+00 : f32
    %89 = vector.broadcast %cst_22 : f32 to vector<3x32xf32>
    %90 = arith.maximumf %77, %89 : vector<3x32xf32>
    %cst_23 = arith.constant 0.000000e+00 : f32
    %91 = vector.broadcast %cst_23 : f32 to vector<3x32xf32>
    %92 = arith.maximumf %88, %91 : vector<3x32xf32>
    %cst_24 = arith.constant 0.000000e+00 : f32
    %93 = vector.broadcast %cst_24 : f32 to vector<1x32xf32>
    %94 = tpu.concatenate %93, %90, %93 in 0 : vector<1x32xf32>, vector<3x32xf32>, vector<1x32xf32> -> vector<5x32xf32>
    %95 = vector.extract_strided_slice %94 {offsets = [0, 0], sizes = [3, 32], strides = [1, 1]} : vector<5x32xf32> to vector<3x32xf32>
    %96 = vector.extract_strided_slice %94 {offsets = [1, 0], sizes = [3, 32], strides = [1, 1]} : vector<5x32xf32> to vector<3x32xf32>
    %97 = vector.extract_strided_slice %94 {offsets = [2, 0], sizes = [3, 32], strides = [1, 1]} : vector<5x32xf32> to vector<3x32xf32>
    %98 = tpu.concatenate %95, %96, %97 in 1 : vector<3x32xf32>, vector<3x32xf32>, vector<3x32xf32> -> vector<3x96xf32>
    %cst_25 = arith.constant 0.000000e+00 : f32
    %99 = vector.broadcast %cst_25 : f32 to vector<1x32xf32>
    %100 = tpu.concatenate %99, %92, %99 in 0 : vector<1x32xf32>, vector<3x32xf32>, vector<1x32xf32> -> vector<5x32xf32>
    %101 = vector.extract_strided_slice %100 {offsets = [0, 0], sizes = [3, 32], strides = [1, 1]} : vector<5x32xf32> to vector<3x32xf32>
    %102 = vector.extract_strided_slice %100 {offsets = [1, 0], sizes = [3, 32], strides = [1, 1]} : vector<5x32xf32> to vector<3x32xf32>
    %103 = vector.extract_strided_slice %100 {offsets = [2, 0], sizes = [3, 32], strides = [1, 1]} : vector<5x32xf32> to vector<3x32xf32>
    %104 = tpu.concatenate %101, %102, %103 in 1 : vector<3x32xf32>, vector<3x32xf32>, vector<3x32xf32> -> vector<3x96xf32>
    %105 = tpu.concatenate %98, %104 in 0 : vector<3x96xf32>, vector<3x96xf32> -> vector<6x96xf32>
    %cst_26 = arith.constant dense<0.000000e+00> : vector<6x32xf32>
    %106 = tpu.matmul %105, %3, %cst_26 {dimension_numbers = #tpu.dot_dimension_numbers<[1], [0], [0], [1], [0, 0, 1, 1], [], []>} : vector<6x96xf32>, vector<96x32xf32>, vector<6x32xf32> -> vector<6x32xf32>
    %107 = vector.broadcast %4 : vector<1x32xf32> to vector<6x32xf32>
    %108 = arith.addf %106, %107 : vector<6x32xf32>
    %109 = vector.extract_strided_slice %108 {offsets = [0, 0], sizes = [3, 32], strides = [1, 1]} : vector<6x32xf32> to vector<3x32xf32>
    %110 = vector.extract_strided_slice %108 {offsets = [3, 0], sizes = [3, 32], strides = [1, 1]} : vector<6x32xf32> to vector<3x32xf32>
    %cst_27 = arith.constant 0.000000e+00 : f32
    %111 = vector.broadcast %cst_27 : f32 to vector<3x32xf32>
    %112 = arith.maximumf %109, %111 : vector<3x32xf32>
    %cst_28 = arith.constant 0.000000e+00 : f32
    %113 = vector.broadcast %cst_28 : f32 to vector<3x32xf32>
    %114 = arith.maximumf %110, %113 : vector<3x32xf32>
    %cst_29 = arith.constant 0.000000e+00 : f32
    %115 = vector.broadcast %cst_29 : f32 to vector<1x32xf32>
    %116 = tpu.concatenate %115, %112, %115 in 0 : vector<1x32xf32>, vector<3x32xf32>, vector<1x32xf32> -> vector<5x32xf32>
    %117 = vector.extract_strided_slice %116 {offsets = [0, 0], sizes = [3, 32], strides = [1, 1]} : vector<5x32xf32> to vector<3x32xf32>
    %118 = vector.extract_strided_slice %116 {offsets = [1, 0], sizes = [3, 32], strides = [1, 1]} : vector<5x32xf32> to vector<3x32xf32>
    %119 = vector.extract_strided_slice %116 {offsets = [2, 0], sizes = [3, 32], strides = [1, 1]} : vector<5x32xf32> to vector<3x32xf32>
    %120 = tpu.concatenate %117, %118, %119 in 1 : vector<3x32xf32>, vector<3x32xf32>, vector<3x32xf32> -> vector<3x96xf32>
    %cst_30 = arith.constant 0.000000e+00 : f32
    %121 = vector.broadcast %cst_30 : f32 to vector<1x32xf32>
    %122 = tpu.concatenate %121, %114, %121 in 0 : vector<1x32xf32>, vector<3x32xf32>, vector<1x32xf32> -> vector<5x32xf32>
    %123 = vector.extract_strided_slice %122 {offsets = [0, 0], sizes = [3, 32], strides = [1, 1]} : vector<5x32xf32> to vector<3x32xf32>
    %124 = vector.extract_strided_slice %122 {offsets = [1, 0], sizes = [3, 32], strides = [1, 1]} : vector<5x32xf32> to vector<3x32xf32>
    %125 = vector.extract_strided_slice %122 {offsets = [2, 0], sizes = [3, 32], strides = [1, 1]} : vector<5x32xf32> to vector<3x32xf32>
    %126 = tpu.concatenate %123, %124, %125 in 1 : vector<3x32xf32>, vector<3x32xf32>, vector<3x32xf32> -> vector<3x96xf32>
    %127 = tpu.concatenate %120, %126 in 0 : vector<3x96xf32>, vector<3x96xf32> -> vector<6x96xf32>
    %cst_31 = arith.constant dense<0.000000e+00> : vector<6x32xf32>
    %128 = tpu.matmul %127, %3, %cst_31 {dimension_numbers = #tpu.dot_dimension_numbers<[1], [0], [0], [1], [0, 0, 1, 1], [], []>} : vector<6x96xf32>, vector<96x32xf32>, vector<6x32xf32> -> vector<6x32xf32>
    %129 = vector.broadcast %4 : vector<1x32xf32> to vector<6x32xf32>
    %130 = arith.addf %128, %129 : vector<6x32xf32>
    %131 = vector.extract_strided_slice %130 {offsets = [0, 0], sizes = [3, 32], strides = [1, 1]} : vector<6x32xf32> to vector<3x32xf32>
    %132 = vector.extract_strided_slice %130 {offsets = [3, 0], sizes = [3, 32], strides = [1, 1]} : vector<6x32xf32> to vector<3x32xf32>
    %133 = arith.addf %131, %77 : vector<3x32xf32>
    %134 = arith.addf %132, %88 : vector<3x32xf32>
    %cst_32 = arith.constant 0.000000e+00 : f32
    %135 = vector.broadcast %cst_32 : f32 to vector<1x32xf32>
    %136 = tpu.concatenate %133, %135 in 0 : vector<3x32xf32>, vector<1x32xf32> -> vector<4x32xf32>
    %137 = vector.extract_strided_slice %136 {offsets = [0, 0], sizes = [2, 32], strides = [1, 1]} : vector<4x32xf32> to vector<2x32xf32>
    %138 = vector.extract_strided_slice %136 {offsets = [1, 0], sizes = [2, 32], strides = [1, 1]} : vector<4x32xf32> to vector<2x32xf32>
    %139 = arith.maximumf %137, %138 : vector<2x32xf32>
    %140 = vector.extract_strided_slice %136 {offsets = [2, 0], sizes = [2, 32], strides = [1, 1]} : vector<4x32xf32> to vector<2x32xf32>
    %141 = arith.maximumf %139, %140 : vector<2x32xf32>
    %142 = vector.extract_strided_slice %141 {offsets = [0, 0], sizes = [1, 32], strides = [1, 1]} : vector<2x32xf32> to vector<1x32xf32>
    %cst_33 = arith.constant 0.000000e+00 : f32
    %143 = vector.broadcast %cst_33 : f32 to vector<1x32xf32>
    %144 = tpu.concatenate %134, %143 in 0 : vector<3x32xf32>, vector<1x32xf32> -> vector<4x32xf32>
    %145 = vector.extract_strided_slice %144 {offsets = [0, 0], sizes = [2, 32], strides = [1, 1]} : vector<4x32xf32> to vector<2x32xf32>
    %146 = vector.extract_strided_slice %144 {offsets = [1, 0], sizes = [2, 32], strides = [1, 1]} : vector<4x32xf32> to vector<2x32xf32>
    %147 = arith.maximumf %145, %146 : vector<2x32xf32>
    %148 = vector.extract_strided_slice %144 {offsets = [2, 0], sizes = [2, 32], strides = [1, 1]} : vector<4x32xf32> to vector<2x32xf32>
    %149 = arith.maximumf %147, %148 : vector<2x32xf32>
    %150 = vector.extract_strided_slice %149 {offsets = [0, 0], sizes = [1, 32], strides = [1, 1]} : vector<2x32xf32> to vector<1x32xf32>
    %cst_34 = arith.constant 0.000000e+00 : f32
    %151 = vector.broadcast %cst_34 : f32 to vector<1x32xf32>
    %152 = arith.maximumf %142, %151 : vector<1x32xf32>
    %cst_35 = arith.constant 0.000000e+00 : f32
    %153 = vector.broadcast %cst_35 : f32 to vector<1x32xf32>
    %154 = arith.maximumf %150, %153 : vector<1x32xf32>
    %cst_36 = arith.constant 0.000000e+00 : f32
    %155 = vector.broadcast %cst_36 : f32 to vector<1x32xf32>
    %156 = tpu.concatenate %155, %152, %155 in 0 : vector<1x32xf32>, vector<1x32xf32>, vector<1x32xf32> -> vector<3x32xf32>
    %157 = vector.extract_strided_slice %156 {offsets = [0, 0], sizes = [1, 32], strides = [1, 1]} : vector<3x32xf32> to vector<1x32xf32>
    %158 = vector.extract_strided_slice %156 {offsets = [1, 0], sizes = [1, 32], strides = [1, 1]} : vector<3x32xf32> to vector<1x32xf32>
    %159 = vector.extract_strided_slice %156 {offsets = [2, 0], sizes = [1, 32], strides = [1, 1]} : vector<3x32xf32> to vector<1x32xf32>
    %160 = tpu.concatenate %157, %158, %159 in 1 : vector<1x32xf32>, vector<1x32xf32>, vector<1x32xf32> -> vector<1x96xf32>
    %cst_37 = arith.constant 0.000000e+00 : f32
    %161 = vector.broadcast %cst_37 : f32 to vector<1x32xf32>
    %162 = tpu.concatenate %161, %154, %161 in 0 : vector<1x32xf32>, vector<1x32xf32>, vector<1x32xf32> -> vector<3x32xf32>
    %163 = vector.extract_strided_slice %162 {offsets = [0, 0], sizes = [1, 32], strides = [1, 1]} : vector<3x32xf32> to vector<1x32xf32>
    %164 = vector.extract_strided_slice %162 {offsets = [1, 0], sizes = [1, 32], strides = [1, 1]} : vector<3x32xf32> to vector<1x32xf32>
    %165 = vector.extract_strided_slice %162 {offsets = [2, 0], sizes = [1, 32], strides = [1, 1]} : vector<3x32xf32> to vector<1x32xf32>
    %166 = tpu.concatenate %163, %164, %165 in 1 : vector<1x32xf32>, vector<1x32xf32>, vector<1x32xf32> -> vector<1x96xf32>
    %167 = tpu.concatenate %160, %166 in 0 : vector<1x96xf32>, vector<1x96xf32> -> vector<2x96xf32>
    %cst_38 = arith.constant dense<0.000000e+00> : vector<2x32xf32>
    %168 = tpu.matmul %167, %3, %cst_38 {dimension_numbers = #tpu.dot_dimension_numbers<[1], [0], [0], [1], [0, 0, 1, 1], [], []>} : vector<2x96xf32>, vector<96x32xf32>, vector<2x32xf32> -> vector<2x32xf32>
    %169 = vector.broadcast %4 : vector<1x32xf32> to vector<2x32xf32>
    %170 = arith.addf %168, %169 : vector<2x32xf32>
    %171 = vector.extract_strided_slice %170 {offsets = [0, 0], sizes = [1, 32], strides = [1, 1]} : vector<2x32xf32> to vector<1x32xf32>
    %172 = vector.extract_strided_slice %170 {offsets = [1, 0], sizes = [1, 32], strides = [1, 1]} : vector<2x32xf32> to vector<1x32xf32>
    %cst_39 = arith.constant 0.000000e+00 : f32
    %173 = vector.broadcast %cst_39 : f32 to vector<1x32xf32>
    %174 = arith.maximumf %171, %173 : vector<1x32xf32>
    %cst_40 = arith.constant 0.000000e+00 : f32
    %175 = vector.broadcast %cst_40 : f32 to vector<1x32xf32>
    %176 = arith.maximumf %172, %175 : vector<1x32xf32>
    %cst_41 = arith.constant 0.000000e+00 : f32
    %177 = vector.broadcast %cst_41 : f32 to vector<1x32xf32>
    %178 = tpu.concatenate %177, %174, %177 in 0 : vector<1x32xf32>, vector<1x32xf32>, vector<1x32xf32> -> vector<3x32xf32>
    %179 = vector.extract_strided_slice %178 {offsets = [0, 0], sizes = [1, 32], strides = [1, 1]} : vector<3x32xf32> to vector<1x32xf32>
    %180 = vector.extract_strided_slice %178 {offsets = [1, 0], sizes = [1, 32], strides = [1, 1]} : vector<3x32xf32> to vector<1x32xf32>
    %181 = vector.extract_strided_slice %178 {offsets = [2, 0], sizes = [1, 32], strides = [1, 1]} : vector<3x32xf32> to vector<1x32xf32>
    %182 = tpu.concatenate %179, %180, %181 in 1 : vector<1x32xf32>, vector<1x32xf32>, vector<1x32xf32> -> vector<1x96xf32>
    %cst_42 = arith.constant 0.000000e+00 : f32
    %183 = vector.broadcast %cst_42 : f32 to vector<1x32xf32>
    %184 = tpu.concatenate %183, %176, %183 in 0 : vector<1x32xf32>, vector<1x32xf32>, vector<1x32xf32> -> vector<3x32xf32>
    %185 = vector.extract_strided_slice %184 {offsets = [0, 0], sizes = [1, 32], strides = [1, 1]} : vector<3x32xf32> to vector<1x32xf32>
    %186 = vector.extract_strided_slice %184 {offsets = [1, 0], sizes = [1, 32], strides = [1, 1]} : vector<3x32xf32> to vector<1x32xf32>
    %187 = vector.extract_strided_slice %184 {offsets = [2, 0], sizes = [1, 32], strides = [1, 1]} : vector<3x32xf32> to vector<1x32xf32>
    %188 = tpu.concatenate %185, %186, %187 in 1 : vector<1x32xf32>, vector<1x32xf32>, vector<1x32xf32> -> vector<1x96xf32>
    %189 = tpu.concatenate %182, %188 in 0 : vector<1x96xf32>, vector<1x96xf32> -> vector<2x96xf32>
    %cst_43 = arith.constant dense<0.000000e+00> : vector<2x32xf32>
    %190 = tpu.matmul %189, %3, %cst_43 {dimension_numbers = #tpu.dot_dimension_numbers<[1], [0], [0], [1], [0, 0, 1, 1], [], []>} : vector<2x96xf32>, vector<96x32xf32>, vector<2x32xf32> -> vector<2x32xf32>
    %191 = vector.broadcast %4 : vector<1x32xf32> to vector<2x32xf32>
    %192 = arith.addf %190, %191 : vector<2x32xf32>
    %193 = vector.extract_strided_slice %192 {offsets = [0, 0], sizes = [1, 32], strides = [1, 1]} : vector<2x32xf32> to vector<1x32xf32>
    %194 = vector.extract_strided_slice %192 {offsets = [1, 0], sizes = [1, 32], strides = [1, 1]} : vector<2x32xf32> to vector<1x32xf32>
    %195 = arith.addf %193, %142 : vector<1x32xf32>
    %196 = arith.addf %194, %150 : vector<1x32xf32>
    %197 = tpu.concatenate %195, %196 in 0 : vector<1x32xf32>, vector<1x32xf32> -> vector<2x32xf32>
    %c0_44 = arith.constant 0 : index
    %c0_45 = arith.constant 0 : index
    %198 = vector.load %arg8[%c0_44, %c0_45] : memref<2x32xf32, #tpu.memory_space<vmem>>, vector<2x32xf32>
    tpu.vector_store %arg8[%c0_44, %c0_45], %197 {strides = array<i32>} : memref<2x32xf32, #tpu.memory_space<vmem>>, vector<2x32xf32>,
    %c0_46 = arith.constant 0 : index
    %c0_47 = arith.constant 0 : index
    %199 = vector.load %arg5[%c0_46, %c0_47] : memref<32x8xf32, #tpu.memory_space<vmem>>, vector<32x8xf32>
    %cst_48 = arith.constant dense<0.000000e+00> : vector<2x8xf32>
    %200 = tpu.matmul %197, %199, %cst_48 {dimension_numbers = #tpu.dot_dimension_numbers<[1], [0], [0], [1], [0, 0, 1, 1], [], []>} : vector<2x32xf32>, vector<32x8xf32>, vector<2x8xf32> -> vector<2x8xf32>
    %c0_49 = arith.constant 0 : index
    %c0_50 = arith.constant 0 : index
    %201 = vector.load %arg6[%c0_49, %c0_50] : memref<1x8xf32, #tpu.memory_space<vmem>>, vector<1x8xf32>
    %202 = vector.broadcast %201 : vector<1x8xf32> to vector<2x8xf32>
    %203 = arith.addf %200, %202 : vector<2x8xf32>
    %c0_51 = arith.constant 0 : index
    %c0_52 = arith.constant 0 : index
    %204 = vector.load %arg7[%c0_51, %c0_52] : memref<2x8xf32, #tpu.memory_space<vmem>>, vector<2x8xf32>
    tpu.vector_store %arg7[%c0_51, %c0_52], %203 {strides = array<i32>} : memref<2x8xf32, #tpu.memory_space<vmem>>, vector<2x8xf32>,
    return
  }
}

</mosaic_0001>

<bundles_post_ra>
// kernel: tpu_custom_call.1
= control target key start
LH: loop header
LB: loop body
LE: loop exit
PB: predicated region body
PF: predicated region fallthrough
CT: control target
= control target key end

     0   :  { %14 = vsyncpa [#allocation3], 0  ;;  %s998_s0 = inlined_call_operand.vmem [shape: f32[2,8,16], index: 0, kind: input, shape index: {}]   ;;  %s999_s1 = inlined_call_operand.vmem [shape: f32[48,32], index: 1, kind: input, shape index: {}]   ;;  %s1000_s2 = inlined_call_operand.vmem [shape: f32[1,32], index: 2, kind: input, shape index: {}]   ;;  %s1001_s3 = inlined_call_operand.vmem [shape: f32[96,32], index: 3, kind: input, shape index: {}]   ;;  %s1002_s4 = inlined_call_operand.vmem [shape: f32[1,32], index: 4, kind: input, shape index: {}]   ;;  %s1003_s5 = inlined_call_operand.vmem [shape: f32[32,8], index: 5, kind: input, shape index: {}]   ;;  %s1004_s6 = inlined_call_operand.vmem [shape: f32[1,8], index: 6, kind: input, shape index: {}]   ;;  %s1005_s7 = inlined_call_operand.hbm [shape: f32[2,8], index: 7, kind: output, shape index: {0}]   ;;  %s1006_s8 = inlined_call_operand.hbm [shape: f32[2,32], index: 8, kind: output, shape index: {1}]  }
   0x1   :  { %v31_v0 = vld [vmem:[%s998_s0 + $0x8] sm:$0xff]  ;;  %v30_v1 = vld [vmem:[%s998_s0] sm:$0xff] }
   0x2   :  { %v66_v2 = vrot.slane %v31_v0, 1  ;;  %v53_v3 = vrot.slane %v30_v1, 1 }
   0x3   :  { %15 = vsyncpa [#allocation5], 0  ;;  %s701_s9 = smov 16   ;;  %v70_v4 = vrot.slane %v31_v0, 2  ;;  %v57_v5 = vrot.slane %v30_v1, 2  ;;  %s702_s10 = smov 32  }
   0x4   :  { %67 = vrot.lane.b32.xlu0 %v66_v2, %s701_s9  ;;  %54 = vrot.lane.b32.xlu1 %v53_v3, %s701_s9  ;;  %v37_v6 = vld [vmem:[%s999_s1 + $0x28] sm:$0xff]  ;;  %v36_v7 = vld [vmem:[%s999_s1 + $0x20] sm:$0xff]  ;;  %vm61_vm0 = vcmask 130048   ;;  %vm63_vm1 = vcmask 261120   ;;  %vm79_vm2 = vcmask 1045504   ;;  %vm84_vm3 = vcmask 392192  }
   0x5   :  { %100 = vmatpush.msra.mxu0 %v37_v6  ;;  %v35_v8 = vld [vmem:[%s999_s1 + $0x18] sm:$0xff]  ;;  %v34_v9 = vld [vmem:[%s999_s1 + $0x10] sm:$0xff]  ;;  %v33_v10 = vld [vmem:[%s999_s1 + $0x8] sm:$0xff]  ;;  %vm118_vm4 = vcmask 1040384   ;;  %vm120_vm5 = vcmask 1046528   ;;  %vm135_vm6 = vcmask 1042432  }
   0x6   :  { %v32_v11 = vld [vmem:[%s999_s1] sm:$0xff]  ;;  %v783_v22 = vld [vmem:[%s1001_s3 + $0x58] sm:$0xff]  ;;  %v788_v23 = vld [vmem:[%s1001_s3 + $0x50] sm:$0xff]  ;;  %vm132_vm7 = vcmask 523264   ;;  %vm160_vm8 = vcmask 785408   ;;  %vm271_vm9 = vcmask 1041408  }
   0x7   :  { %101 = vmatpush.msra.mxu0 %v36_v7  ;;  %v646_v24 = vld [vmem:[%s1000_s2] ss:$0 sm:$0xff]  ;;  %170 = vmatpush.msra.mxu1 %v783_v22  ;;  %v798_v25 = vld [vmem:[%s1001_s3 + $0x48] sm:$0xff]  ;;  %s703_s2 = smov 64   ;;  %v46_v45 = vld [vmem:[%s1001_s3 + $0x38] sm:$0xff]  ;;  %vm300_vm10 = vcmask 1043456  }
   0x8   :  { %238 = vmatpush.msra.mxu2 %v783_v22  ;;  %340 = vmatpush.msra.mxu3 %v783_v22  ;;  %v47_v44 = vld [vmem:[%s1001_s3 + $0x40] sm:$0xff]  ;;  %v45_v46 = vld [vmem:[%s1001_s3 + $0x30] sm:$0xff]  ;;  %v44_v47 = vld [vmem:[%s1001_s3 + $0x28] sm:$0xff]  ;;  %vm563_vm11 = vcmask 254976   ;;  %s704_s30 = smov [#allocation4]   ;;  %s616_s12 = sshll.u32 %s1006_s8, 4  ;;  %s617_s12 = int_to_ptr.hbm [resolvable:$true] %s616_s12 }
   0x9   :  { %102 = vmatpush.msra.mxu0 %v35_v8  ;;  %171 = vmatpush.msra.mxu1 %v788_v23  ;;  %v43_v48 = vld [vmem:[%s1001_s3 + $0x20] sm:$0xff]  ;;  %v42_v49 = vld [vmem:[%s1001_s3 + $0x18] sm:$0xff]  ;;  %v41_v50 = vld [vmem:[%s1001_s3 + $0x10] sm:$0xff]  ;;  %s614_s9 = sshll.u32 %s704_s30, 4  ;;  %s705_s0 = smov [#allocation2]   ;;  %vm596_vm12 = vcmask 58368   ;;  %s615_s9 = int_to_ptr.vmem [resolvable:$true] %s614_s9 }
   0xa   :  { %239 = vmatpush.msra.mxu2 %v788_v23  ;;  %341 = vmatpush.msra.mxu3 %v788_v23  ;;  %v40_v51 = vld [vmem:[%s1001_s3 + $0x8] sm:$0xff]  ;;  %v39_v52 = vld [vmem:[%s1001_s3] sm:$0xff]  ;;  %s603_s15 = sshll.u32 %s705_s0, 4  ;;  %s605_s18 = sshll.u32 %s1005_s7, 4  ;;  %s604_s15 = int_to_ptr.vmem [resolvable:$true] %s603_s15  ;;  %s606_s18 = int_to_ptr.hbm [resolvable:$true] %s605_s18 }
   0xb   :  { %103 = vmatpush.msra.mxu0 %v34_v9  ;;  %172 = vmatpush.msra.mxu1 %v798_v25  ;;  %v872_v63 = vld [vmem:[%s1002_s4] ss:$0 sm:$0xff] }
   0xc   :  { %71 = vrot.lane.b32.xlu0 %v70_v4, %s702_s10  ;;  %58 = vrot.lane.b32.xlu1 %v57_v5, %s702_s10 }
   0xd   :  { %104 = vmatpush.msra.mxu0 %v33_v10  ;;  %240 = vmatpush.msra.mxu2 %v798_v25 }
   0xe   :  { %342 = vmatpush.msra.mxu3 %v798_v25  ;;  %173 = vmatpush.msra.mxu1 %v47_v44 }
   0xf   :  { %105 = vmatpush.msra.mxu0 %v32_v11  ;;  %241 = vmatpush.msra.mxu2 %v47_v44 }
  0x10   :  { %343 = vmatpush.msra.mxu3 %v47_v44  ;;  %174 = vmatpush.msra.mxu1 %v46_v45 }
  0x11   :  { %399 = vmatpush.msrb.mxu0 %v783_v22  ;;  %242 = vmatpush.msra.mxu2 %v46_v45 }
  0x12   :  { %344 = vmatpush.msra.mxu3 %v46_v45  ;;  %175 = vmatpush.msra.mxu1 %v45_v46 }
  0x13   :  { %400 = vmatpush.msrb.mxu0 %v788_v23  ;;  %243 = vmatpush.msra.mxu2 %v45_v46 }
  0x14   :  { %345 = vmatpush.msra.mxu3 %v45_v46  ;;  %176 = vmatpush.msra.mxu1 %v44_v47 }
  0x15   :  { %401 = vmatpush.msrb.mxu0 %v798_v25  ;;  %244 = vmatpush.msra.mxu2 %v44_v47 }
  0x16   :  { %346 = vmatpush.msra.mxu3 %v44_v47  ;;  %177 = vmatpush.msra.mxu1 %v43_v48 }
  0x17   :  { %402 = vmatpush.msrb.mxu0 %v47_v44  ;;  %245 = vmatpush.msra.mxu2 %v43_v48 }
  0x18   :  { %347 = vmatpush.msra.mxu3 %v43_v48  ;;  %178 = vmatpush.msra.mxu1 %v42_v49 }
  0x19   :  { %403 = vmatpush.msrb.mxu0 %v46_v45  ;;  %246 = vmatpush.msra.mxu2 %v42_v49 }
  0x1a   :  { %348 = vmatpush.msra.mxu3 %v42_v49  ;;  %179 = vmatpush.msra.mxu1 %v41_v50 }
  0x1b   :  { %404 = vmatpush.msrb.mxu0 %v45_v46  ;;  %247 = vmatpush.msra.mxu2 %v41_v50 }
  0x1c   :  { %349 = vmatpush.msra.mxu3 %v41_v50  ;;  %180 = vmatpush.msra.mxu1 %v40_v51 }
  0x1d   :  { %405 = vmatpush.msrb.mxu0 %v44_v47  ;;  %248 = vmatpush.msra.mxu2 %v40_v51 }
  0x1e   :  { %350 = vmatpush.msra.mxu3 %v40_v51  ;;  %181 = vmatpush.msra.mxu1 %v39_v52 }
  0x1f   :  { %406 = vmatpush.msrb.mxu0 %v43_v48  ;;  %249 = vmatpush.msra.mxu2 %v39_v52 }
  0x20   :  { %351 = vmatpush.msra.mxu3 %v39_v52  ;;  %484 = vmatpush.msrb.mxu1 %v783_v22 }
  0x21   :  { %407 = vmatpush.msrb.mxu0 %v42_v49  ;;  %541 = vmatpush.msrb.mxu2 %v783_v22 }
  0x22   :  { %485 = vmatpush.msrb.mxu1 %v788_v23 }
  0x23   :  { %408 = vmatpush.msrb.mxu0 %v41_v50  ;;  %542 = vmatpush.msrb.mxu2 %v788_v23 }
  0x24   :  { %486 = vmatpush.msrb.mxu1 %v798_v25 }
  0x25   :  { %409 = vmatpush.msrb.mxu0 %v40_v51  ;;  %543 = vmatpush.msrb.mxu2 %v798_v25 }
  0x26   :  { %487 = vmatpush.msrb.mxu1 %v47_v44 }
  0x27   :  { %410 = vmatpush.msrb.mxu0 %v39_v52  ;;  %544 = vmatpush.msrb.mxu2 %v47_v44 }
  0x28   :  { %488 = vmatpush.msrb.mxu1 %v46_v45 }
  0x29   :  { %545 = vmatpush.msrb.mxu2 %v46_v45 }
  0x2a   :  { %489 = vmatpush.msrb.mxu1 %v45_v46 }
  0x2b   :  { %546 = vmatpush.msrb.mxu2 %v45_v46 }
  0x2c   :  { %490 = vmatpush.msrb.mxu1 %v44_v47 }
  0x2d   :  { %547 = vmatpush.msrb.mxu2 %v44_v47 }
  0x2e   :  { %491 = vmatpush.msrb.mxu1 %v43_v48 }
  0x2f   :  { %548 = vmatpush.msrb.mxu2 %v43_v48 }
  0x30   :  { %492 = vmatpush.msrb.mxu1 %v42_v49 }
  0x31   :  { %549 = vmatpush.msrb.mxu2 %v42_v49 }
  0x32   :  { %493 = vmatpush.msrb.mxu1 %v41_v50 }
  0x33   :  { %550 = vmatpush.msrb.mxu2 %v41_v50 }
  0x34   :  { %494 = vmatpush.msrb.mxu1 %v40_v51 }
  0x35   :  { %551 = vmatpush.msrb.mxu2 %v40_v51 }
  0x36   :  { %495 = vmatpush.msrb.mxu1 %v39_v52 }
  0x37   :  { %552 = vmatpush.msrb.mxu2 %v39_v52 }
  0x76   :  { %v68_v12 = vpop.permute.xlu0 %67  ;;  %v55_v13 = vpop.permute.xlu1 %54 }
  0x77   :  { %v74_v14 = vsel %vm61_vm0, %v31_v0, %v68_v12  ;;  %v62_v18 = vsel %vm61_vm0, %v30_v1, %v55_v13 }
  0x7e   :  { %v72_v15 = vpop.permute.xlu0 %71  ;;  %v59_v16 = vpop.permute.xlu1 %58 }
  0x7f   :  { %v75_v17 = vsel %vm63_vm1, %v74_v14, %v72_v15  ;;  %v64_v20 = vsel %vm63_vm1, %v62_v18, %v59_v16 }
  0x80   :  { %v77_v19 = vrot.slane %v75_v17, 2 }
  0x82   :  { %v80_v21 = vsel %vm79_vm2, %v64_v20, %v77_v19 }
  0x83   :  { %630 = vmatmul.msk.f32.vlgmr.msra.gmra.mxu0 %vm84_vm3, %v80_v21 }
  0x8b   :  { %631 = vmatmul.msk.f32.gmra.mxu0 %vm84_vm3, %v77_v19 }
 0x100   :  { %v107_v26 = vpop.f32.mrf.mxu0 }
 0x101   :  { %v108_v27 = vadd.f32 %v646_v24, %v107_v26 }
 0x103   :  { %v113_v28 = vmax.f32 %v108_v27, 0.0 }
 0x105   :  { %v116_v29 = vrot.slane %v113_v28, 7  ;;  %v136_v37 = vrot.slane %v113_v28, 5 }
 0x107   :  { %v119_v30 = vsel %vm118_vm4, 0.0, %v116_v29 }
 0x108   :  { %v812_v31 = vsel %vm120_vm5, %v119_v30, 0.0  ;;  %v110_v32 = vpop.f32.mrf.mxu0 }
 0x109   :  { %v111_v33 = vadd.f32 %v646_v24, %v110_v32  ;;  %v127_v34 = vrot.slane %v812_v31, 2  ;;  %v123_v35 = vrot.slane %v812_v31, 1 }
 0x10b   :  { %v114_v36 = vmax.f32 %v111_v33, 0.0  ;;  %128 = vrot.lane.b32.xlu1 %v127_v34, %s703_s2  ;;  %124 = vrot.lane.b32.xlu0 %v123_v35, %s702_s10 }
 0x10d   :  { %v137_v38 = vrot.slane %v114_v36, 5 }
 0x10f   :  { %v138_v39 = vsel %vm135_vm6, %v136_v37, %v137_v38 }
 0x110   :  { %v140_v40 = vsel %vm118_vm4, 0.0, %v138_v39 }
 0x111   :  { %v821_v41 = vsel %vm120_vm5, %v140_v40, 0.0 }
 0x112   :  { %v143_v42 = vrot.slane %v821_v41, 1  ;;  %v147_v43 = vrot.slane %v821_v41, 2 }
 0x114   :  { %144 = vrot.lane.b32.xlu2 %v143_v42, %s702_s10 }
 0x11c   :  { %148 = vrot.lane.b32.xlu2 %v147_v43, %s703_s2 }
 0x16e   :  { %v145_v53 = vpop.permute.xlu2 %144 }
 0x16f   :  { %v151_v55 = vsel %vm63_vm1, %v821_v41, %v145_v53 }
 0x176   :  { %v149_v54 = vpop.permute.xlu2 %148 }
 0x177   :  { %v152_v56 = vsel %vm132_vm7, %v151_v55, %v149_v54 }
 0x178   :  { %v154_v59 = vrot.slane %v152_v56, 2 }
 0x17d   :  { %v129_v57 = vpop.permute.xlu1 %128  ;;  %v125_v58 = vpop.permute.xlu0 %124 }
 0x17e   :  { %v131_v60 = vsel %vm63_vm1, %v812_v31, %v125_v58 }
 0x17f   :  { %v133_v61 = vsel %vm132_vm7, %v131_v60, %v129_v57 }
 0x180   :  { %v156_v62 = vsel %vm79_vm2, %v133_v61, %v154_v59 }
 0x181   :  { %632 = vmatmul.msk.f32.vlgmr.msra.gmra.mxu1 %vm160_vm8, %v156_v62 }
 0x189   :  { %633 = vmatmul.msk.f32.gmra.mxu1 %vm160_vm8, %v154_v59 }
 0x1fe   :  { %v183_v0 = vpop.f32.mrf.mxu1 }
 0x1ff   :  { %v184_v1 = vadd.f32 %v872_v63, %v183_v0 }
 0x201   :  { %v189_v2 = vmax.f32 %v184_v1, 0.0 }
 0x203   :  { %v192_v3 = vrot.slane %v189_v2, 7  ;;  %v208_v10 = vrot.slane %v189_v2, 5 }
 0x205   :  { %v194_v4 = vsel %vm118_vm4, 0.0, %v192_v3 }
 0x206   :  { %v195_v5 = vsel %vm120_vm5, %v194_v4, 0.0  ;;  %v186_v6 = vpop.f32.mrf.mxu1 }
 0x207   :  { %v187_v7 = vadd.f32 %v872_v63, %v186_v6  ;;  %v197_v8 = vrot.slane %v195_v5, 1  ;;  %v201_v17 = vrot.slane %v195_v5, 2 }
 0x209   :  { %v190_v9 = vmax.f32 %v187_v7, 0.0  ;;  %198 = vrot.lane.b32.xlu1 %v197_v8, %s702_s10 }
 0x20b   :  { %v209_v11 = vrot.slane %v190_v9, 5 }
 0x20d   :  { %v210_v12 = vsel %vm135_vm6, %v208_v10, %v209_v11 }
 0x20e   :  { %v212_v13 = vsel %vm118_vm4, 0.0, %v210_v12 }
 0x20f   :  { %v213_v14 = vsel %vm120_vm5, %v212_v13, 0.0 }
 0x210   :  { %v219_v15 = vrot.slane %v213_v14, 2  ;;  %v215_v16 = vrot.slane %v213_v14, 1 }
 0x212   :  { %220 = vrot.lane.b32.xlu0 %v219_v15, %s703_s2  ;;  %216 = vrot.lane.b32.xlu2 %v215_v16, %s702_s10 }
 0x21a   :  { %202 = vrot.lane.b32.xlu2 %v201_v17, %s703_s2 }
 0x26c   :  { %v217_v18 = vpop.permute.xlu2 %216 }
 0x26d   :  { %v223_v20 = vsel %vm63_vm1, %v213_v14, %v217_v18 }
 0x274   :  { %v203_v24 = vpop.permute.xlu2 %202 }
 0x27b   :  { %v199_v19 = vpop.permute.xlu1 %198 }
 0x27c   :  { %v205_v21 = vsel %vm63_vm1, %v195_v5, %v199_v19 }
 0x27d   :  { %v206_v26 = vsel %vm132_vm7, %v205_v21, %v203_v24 }
 0x284   :  { %v221_v22 = vpop.permute.xlu0 %220 }
 0x285   :  { %v224_v23 = vsel %vm132_vm7, %v223_v20, %v221_v22 }
 0x286   :  { %v226_v25 = vrot.slane %v224_v23, 2 }
 0x288   :  { %v228_v27 = vsel %vm79_vm2, %v206_v26, %v226_v25 }
 0x289   :  { %634 = vmatmul.msk.f32.vlgmr.msra.gmra.mxu2 %vm160_vm8, %v228_v27 }
 0x291   :  { %635 = vmatmul.msk.f32.gmra.mxu2 %vm160_vm8, %v226_v25 }
 0x30c   :  { %v251_v28 = vpop.f32.mrf.mxu2 }
 0x30d   :  { %v252_v29 = vadd.f32 %v872_v63, %v251_v28 }
 0x30f   :  { %v257_v30 = vsel %vm79_vm2, %v252_v29, 0.0  ;;  %v275_v39 = vrot.slane %v252_v29, 6 }
 0x310   :  { %v259_v31 = vrot.slane %v257_v30, 1  ;;  %v262_v33 = vrot.slane %v257_v30, 2 }
 0x312   :  { %v261_v32 = vmax.f32 %v257_v30, %v259_v31 }
 0x314   :  { %v264_v34 = vmax.f32 %v261_v32, %v262_v33  ;;  %v254_v35 = vpop.f32.mrf.mxu2 }
 0x315   :  { %v255_v36 = vadd.f32 %v872_v63, %v254_v35 }
 0x316   :  { %v266_v37 = vrot.slane %v264_v34, 1  ;;  %v268_v38 = vrot.slane %v264_v34, 2 }
 0x317   :  { %v276_v40 = vrot.slane %v255_v36, 6 }
 0x318   :  { %v270_v41 = vsel %vm118_vm4, %v264_v34, %v266_v37 }
 0x319   :  { %v277_v42 = vsel %vm271_vm9, %v275_v39, %v276_v40  ;;  %v898_v43 = vsel %vm271_vm9, %v270_v41, %v268_v38 }
 0x31a   :  { %v279_v44 = vsel %vm79_vm2, %v277_v42, 0.0  ;;  %v294_v45 = vmax.f32 %v898_v43, 0.0 }
 0x31b   :  { %v281_v46 = vrot.slane %v279_v44, 1  ;;  %v284_v49 = vrot.slane %v279_v44, 2 }
 0x31c   :  { %v297_v47 = vrot.slane %v294_v45, 7 }
 0x31d   :  { %v283_v48 = vmax.f32 %v279_v44, %v281_v46 }
 0x31e   :  { %v299_v50 = vsel %vm118_vm4, 0.0, %v297_v47 }
 0x31f   :  { %v286_v51 = vmax.f32 %v283_v48, %v284_v49  ;;  %v301_v52 = vsel %vm300_vm10, %v299_v50, 0.0 }
 0x320   :  { %v303_v53 = vrot.slane %v301_v52, 1  ;;  %v307_v1 = vrot.slane %v301_v52, 2 }
 0x321   :  { %v288_v54 = vrot.slane %v286_v51, 1  ;;  %v290_v55 = vrot.slane %v286_v51, 2 }
 0x322   :  { %304 = vrot.lane.b32.xlu2 %v303_v53, %s702_s10 }
 0x323   :  { %v292_v56 = vsel %vm118_vm4, %v286_v51, %v288_v54 }
 0x324   :  { %v293_v57 = vsel %vm271_vm9, %v292_v56, %v290_v55 }
 0x325   :  { %v295_v58 = vmax.f32 %v293_v57, 0.0  ;;  %v417_v37 = vrot.slane %v293_v57, 5 }
 0x327   :  { %v314_v59 = vrot.slane %v295_v58, 7 }
 0x329   :  { %v316_v60 = vsel %vm118_vm4, 0.0, %v314_v59 }
 0x32a   :  { %v317_v61 = vsel %vm300_vm10, %v316_v60, 0.0 }
 0x32b   :  { %v323_v62 = vrot.slane %v317_v61, 2  ;;  %v319_v0 = vrot.slane %v317_v61, 1 }
 0x32d   :  { %324 = vrot.lane.b32.xlu1 %v323_v62, %s703_s2  ;;  %320 = vrot.lane.b32.xlu0 %v319_v0, %s702_s10 }
 0x335   :  { %308 = vrot.lane.b32.xlu0 %v307_v1, %s703_s2 }
 0x37c   :  { %v305_v5 = vpop.permute.xlu2 %304 }
 0x37d   :  { %v311_v7 = vsel %vm63_vm1, %v301_v52, %v305_v5 }
 0x39f   :  { %v321_v2 = vpop.permute.xlu0 %320  ;;  %v325_v3 = vpop.permute.xlu1 %324 }
 0x3a0   :  { %v327_v4 = vsel %vm63_vm1, %v317_v61, %v321_v2 }
 0x3a1   :  { %v328_v6 = vsel %vm132_vm7, %v327_v4, %v325_v3 }
 0x3a2   :  { %v330_v8 = vrot.slane %v328_v6, 5 }
 0x3a7   :  { %v309_v9 = vpop.permute.xlu0 %308 }
 0x3a8   :  { %v312_v10 = vsel %vm132_vm7, %v311_v7, %v309_v9 }
 0x3a9   :  { %v332_v11 = vsel %vm135_vm6, %v312_v10, %v330_v8 }
 0x3aa   :  { %636 = vmatmul.msk.f32.vlgmr.msra.gmra.mxu3 %vm160_vm8, %v332_v11 }
 0x42d   :  { %v353_v12 = vpop.f32.mrf.mxu3 }
 0x42e   :  { %v354_v13 = vadd.f32 %v872_v63, %v353_v12 }
 0x430   :  { %v356_v14 = vmax.f32 %v354_v13, 0.0 }
 0x432   :  { %v358_v15 = vrot.slane %v356_v14, 7  ;;  %v373_v16 = vrot.slane %v356_v14, 2 }
 0x434   :  { %v360_v17 = vsel %vm118_vm4, 0.0, %v358_v15  ;;  %v375_v18 = vsel %vm118_vm4, 0.0, %v373_v16 }
 0x435   :  { %v361_v19 = vsel %vm300_vm10, %v360_v17, 0.0  ;;  %v376_v20 = vsel %vm300_vm10, %v375_v18, 0.0 }
 0x436   :  { %v382_v21 = vrot.slane %v376_v20, 2  ;;  %v378_v22 = vrot.slane %v376_v20, 1  ;;  %v363_v23 = vrot.slane %v361_v19, 1  ;;  %v367_v24 = vrot.slane %v361_v19, 2 }
 0x438   :  { %383 = vrot.lane.b32.xlu2 %v382_v21, %s703_s2  ;;  %379 = vrot.lane.b32.xlu1 %v378_v22, %s702_s10  ;;  %v568_v22 = vld [vmem:[%s1003_s5 + $0x18] sm:$0xff] }
 0x439   :  { %364 = vrot.lane.b32.xlu0 %v363_v23, %s702_s10  ;;  %588 = vmatpush.msrb.mxu3 %v568_v22 }
 0x440   :  { %368 = vrot.lane.b32.xlu1 %v367_v24, %s703_s2 }
 0x492   :  { %v384_v27 = vpop.permute.xlu2 %383 }
 0x4aa   :  { %v380_v25 = vpop.permute.xlu1 %379 }
 0x4ab   :  { %v386_v26 = vsel %vm63_vm1, %v376_v20, %v380_v25  ;;  %v365_v29 = vpop.permute.xlu0 %364 }
 0x4ac   :  { %v387_v28 = vsel %vm132_vm7, %v386_v26, %v384_v27  ;;  %v371_v31 = vsel %vm63_vm1, %v361_v19, %v365_v29 }
 0x4ad   :  { %v389_v30 = vrot.slane %v387_v28, 5 }
 0x4b2   :  { %v369_v32 = vpop.permute.xlu1 %368 }
 0x4b3   :  { %v372_v33 = vsel %vm132_vm7, %v371_v31, %v369_v32 }
 0x4b4   :  { %v391_v34 = vsel %vm135_vm6, %v372_v33, %v389_v30  ;;  %v567_v33 = vld [vmem:[%s1003_s5 + $0x10] sm:$0xff] }
 0x4b5   :  { %637 = vmatmul.msk.f32.vlgmr.msrb.gmra.mxu0 %vm160_vm8, %v391_v34  ;;  %589 = vmatpush.msrb.mxu3 %v567_v33  ;;  %v566_v34 = vld [vmem:[%s1003_s5 + $0x8] sm:$0xff] }
 0x4b7   :  { %590 = vmatpush.msrb.mxu3 %v566_v34 }
 0x532   :  { %v412_v35 = vpop.f32.mrf.mxu0 }
 0x533   :  { %v413_v36 = vadd.f32 %v872_v63, %v412_v35  ;;  %v565_v35 = vld [vmem:[%s1003_s5] sm:$0xff] }
 0x534   :  { %591 = vmatpush.msrb.mxu3 %v565_v35 }
 0x535   :  { %v415_v38 = vadd.f32 %v413_v36, %v898_v43  ;;  %v419_v39 = vadd.f32 %v417_v37, %v413_v36 }
 0x537   :  { %v420_v40 = vsel %vm135_vm6, %v415_v38, 0.0  ;;  %v429_v41 = vrot.slane %v419_v39, 3 }
 0x538   :  { %v422_v42 = vrot.slane %v420_v40, 1  ;;  %v425_v46 = vrot.slane %v420_v40, 2 }
 0x539   :  { %v431_v44 = vsel %vm135_vm6, %v429_v41, 0.0 }
 0x53a   :  { %v424_v45 = vmax.f32 %v420_v40, %v422_v42  ;;  %v433_v47 = vrot.slane %v431_v44, 1  ;;  %v436_v50 = vrot.slane %v431_v44, 2 }
 0x53c   :  { %v937_v48 = vmax.f32 %v424_v45, %v425_v46  ;;  %v435_v49 = vmax.f32 %v431_v44, %v433_v47 }
 0x53e   :  { %v939_v51 = vmax.f32 %v435_v49, %v436_v50  ;;  %v439_v52 = vmax.f32 %v937_v48, 0.0 }
 0x540   :  { %v442_v53 = vrot.slane %v439_v52, 7  ;;  %v440_v43 = vmax.f32 %v939_v51, 0.0  ;;  %v559_v38 = vrot.slane %v939_v51, 7 }
 0x542   :  { %v444_v54 = vsel %vm118_vm4, 0.0, %v442_v53  ;;  %v458_v55 = vrot.slane %v440_v43, 7 }
 0x543   :  { %v445_v56 = vsel %vm271_vm9, %v444_v54, 0.0 }
 0x544   :  { %v447_v57 = vrot.slane %v445_v56, 1  ;;  %v460_v58 = vsel %vm118_vm4, 0.0, %v458_v55  ;;  %v451_v62 = vrot.slane %v445_v56, 2 }
 0x545   :  { %v461_v59 = vsel %vm271_vm9, %v460_v58, 0.0 }
 0x546   :  { %448 = vrot.lane.b32.xlu1 %v447_v57, %s702_s10  ;;  %v467_v60 = vrot.slane %v461_v59, 2  ;;  %v463_v61 = vrot.slane %v461_v59, 1 }
 0x548   :  { %468 = vrot.lane.b32.xlu0 %v467_v60, %s703_s2  ;;  %464 = vrot.lane.b32.xlu2 %v463_v61, %s702_s10 }
 0x550   :  { %452 = vrot.lane.b32.xlu2 %v451_v62, %s703_s2 }
 0x5a2   :  { %v465_v0 = vpop.permute.xlu2 %464 }
 0x5a3   :  { %v471_v2 = vsel %vm63_vm1, %v461_v59, %v465_v0 }
 0x5aa   :  { %v453_v6 = vpop.permute.xlu2 %452 }
 0x5b8   :  { %v449_v1 = vpop.permute.xlu1 %448 }
 0x5b9   :  { %v455_v3 = vsel %vm63_vm1, %v445_v56, %v449_v1 }
 0x5ba   :  { %v469_v4 = vpop.permute.xlu0 %468  ;;  %v456_v8 = vsel %vm132_vm7, %v455_v3, %v453_v6 }
 0x5bb   :  { %v472_v5 = vsel %vm132_vm7, %v471_v2, %v469_v4 }
 0x5bc   :  { %v474_v7 = vrot.slane %v472_v5, 7 }
 0x5be   :  { %v476_v9 = vsel %vm118_vm4, %v456_v8, %v474_v7 }
 0x5bf   :  { %638 = vmatmul.msk.f32.vlgmr.msrb.gmra.mxu1 %vm160_vm8, %v476_v9 }
 0x63c   :  { %v497_v10 = vpop.f32.mrf.mxu1 }
 0x63d   :  { %v498_v11 = vadd.f32 %v872_v63, %v497_v10 }
 0x63f   :  { %v500_v12 = vmax.f32 %v498_v11, 0.0 }
 0x641   :  { %v502_v13 = vrot.slane %v500_v12, 7  ;;  %v517_v14 = vsel %vm118_vm4, 0.0, %v500_v12 }
 0x642   :  { %v518_v15 = vsel %vm271_vm9, %v517_v14, 0.0 }
 0x643   :  { %v504_v16 = vsel %vm118_vm4, 0.0, %v502_v13  ;;  %v524_v17 = vrot.slane %v518_v15, 2  ;;  %v520_v18 = vrot.slane %v518_v15, 1 }
 0x644   :  { %v505_v19 = vsel %vm271_vm9, %v504_v16, 0.0 }
 0x645   :  { %525 = vrot.lane.b32.xlu1 %v524_v17, %s703_s2  ;;  %521 = vrot.lane.b32.xlu0 %v520_v18, %s702_s10  ;;  %v507_v20 = vrot.slane %v505_v19, 1  ;;  %v511_v21 = vrot.slane %v505_v19, 2 }
 0x647   :  { %508 = vrot.lane.b32.xlu2 %v507_v20, %s702_s10 }
 0x64d   :  { %512 = vrot.lane.b32.xlu0 %v511_v21, %s703_s2 }
 0x6a1   :  { %v509_v26 = vpop.permute.xlu2 %508 }
 0x6a2   :  { %v515_v28 = vsel %vm63_vm1, %v505_v19, %v509_v26 }
 0x6b7   :  { %v522_v23 = vpop.permute.xlu0 %521  ;;  %v526_v24 = vpop.permute.xlu1 %525 }
 0x6b8   :  { %v528_v25 = vsel %vm63_vm1, %v518_v15, %v522_v23 }
 0x6b9   :  { %v529_v27 = vsel %vm132_vm7, %v528_v25, %v526_v24 }
 0x6ba   :  { %v531_v29 = vrot.slane %v529_v27, 7 }
 0x6bf   :  { %v513_v30 = vpop.permute.xlu0 %512 }
 0x6c0   :  { %v516_v31 = vsel %vm132_vm7, %v515_v28, %v513_v30 }
 0x6c1   :  { %v533_v32 = vsel %vm118_vm4, %v516_v31, %v531_v29 }
 0x6c2   :  { %639 = vmatmul.msk.f32.vlgmr.msrb.gmra.mxu2 %vm160_vm8, %v533_v32 }
 0x745   :  { %v554_v36 = vpop.f32.mrf.mxu2 }
 0x746   :  { %v555_v37 = vadd.f32 %v872_v63, %v554_v36  ;;  %v648_v63 = vld [vmem:[%s1004_s6] ss:$0 sm:$0xff] }
 0x748   :  { %v557_v39 = vadd.f32 %v555_v37, %v937_v48  ;;  %v561_v40 = vadd.f32 %v559_v38, %v555_v37 }
 0x74a   :  { %v562_v41 = vsel %vm118_vm4, %v557_v39, %v561_v40 }
 0x74b   :  { %640 = vmatmul.msk.f32.vlgmr.msrb.gmra.mxu3 %vm63_vm1, %v562_v41  ;;  %564 = vst.msk [vmem:[#allocation4] sm:$0x3] %vm563_vm11, %v562_v41 }
 0x74c   :  { %619 = dma.vmem_to_hbm [thread:$0]  %s615_s9, 32, %s617_s12, [#allocation5]  }
 0x7ce   :  { %v593_v42 = vpop.f32.mrf.mxu3 }
 0x7cf   :  { %v594_v44 = vadd.f32 %v648_v63, %v593_v42 }
 0x7d1   :  { %597 = vst.msk [vmem:[#allocation2] sm:$0x3] %vm596_vm12, %v594_v44 }
 0x7d2   :  { %608 = dma.vmem_to_hbm [thread:$0]  %s604_s15, 32, %s606_s18, [#allocation3]  }
 0x7d3   :  { %697 = dma.done.wait [#allocation3], 32  }
 0x7d4   :  { %698 = vsyncadd [#allocation3], 4294967264 }
 0x7d5   :  { %699 = dma.done.wait [#allocation5], 32  }
 0x7d6   :  { %700 = vsyncadd [#allocation5], 4294967264 }
 0x7d7   :  { %628 = vsyncpa [#allocation3], 1 }
 0x7d8   :  { %629 = vsyncpa [#allocation5], 1 }

</bundles_post_ra>
